<compile_context>
chip_gen: v5e
topology: v5e:2x2
jax: 0.10.0
libtpu: 0.0.40
codegen_flags: <defaults>
</compile_context>

<pallas_src>
import functools

import jax
import jax.numpy as jnp
import numpy as np
from jax.experimental import pallas as pl
from jax.experimental.pallas import tpu as pltpu


def _round_up(n, m):
    return ((n + m - 1) // m) * m


def _vmem_budget_bytes():
    """Physical-VMEM-aware scoped limit with headroom for Mosaic internal scratch.

    ~48 MiB on v7x (64 MiB physical), ~96 MiB on v5e/v6e (128 MiB physical).
    """
    try:
        cap = int(getattr(pltpu.get_tpu_info(), "vmem_capacity_bytes", 0) or 0)
    except Exception:  # hardware probe only; fall back to the smallest (v7x) size
        cap = 0
    if cap <= 0:
        cap = 64 * 1024 * 1024
    return int(min(cap * 3 // 4, cap - (8 << 20)))


def _vae_kernel(x_ref, w12_ref, w3_ref, b3_ref, scale_ref, eps_ref,
                xrec_ref, mu_ref, logvar_ref, *, approx):
    z_dim = eps_ref.shape[-1]          # (padded) latent width; lane-aligned split point
    mm_dtype = w12_ref.dtype           # matmul operand dtype (bf16 or f32)

    # ---- encode: logit(clamp(x, 0.01, 0.99)) with a single log (halves EUP work) ----
    xc = jnp.clip(x_ref[...], 0.01, 0.99)
    if approx:
        xl = jnp.log(xc * pl.reciprocal(1.0 - xc, approx=True))
    else:
        xl = jnp.log(xc / (1.0 - xc))

    # Fused fc1|fc2: one MXU pass with N = 2*z_dim lanes, f32 accumulation.
    enc = jnp.dot(xl.astype(mm_dtype), w12_ref[...],
                  preferred_element_type=jnp.float32)            # [tb, 2*z_dim]

    scale = scale_ref[...]             # [tb, 1] = mean(cw)/cw (hoisted global reduction)
    mu = enc[:, :z_dim] * scale
    log_var = enc[:, z_dim:] * scale

    # ---- reparameterize (eps supplied; could use pltpu.stateful_normal in-kernel) ----
    z = mu + eps_ref[...] * jnp.exp(log_var * 0.5)

    # ---- decode ----
    logits = jnp.dot(z.astype(mm_dtype), w3_ref[...],
                     preferred_element_type=jnp.float32) + b3_ref[...]
    if approx:
        # sigmoid via EUP exp + approx reciprocal (reciprocal slot is ~free).
        xrec = pl.reciprocal(1.0 + jnp.exp(-logits), approx=True)
    else:
        xrec = 1.0 / (1.0 + jnp.exp(-logits))

    xrec_ref[...] = xrec.astype(xrec_ref.dtype)
    mu_ref[...] = mu.astype(mu_ref.dtype)
    logvar_ref[...] = log_var.astype(logvar_ref.dtype)


@functools.partial(
    jax.jit,
    static_argnames=("block_b", "compute_dtype", "approx_transcendentals", "xrec_dtype"))
def vae_normalized_forward(x, w1, w2, w3, b3, cw, eps, *,
                           block_b=512,
                           compute_dtype=jnp.bfloat16,
                           approx_transcendentals=None,
                           xrec_dtype=None):
    """x: [B, obs_dim]; w1, w2: [obs_dim, z_dim]; w3: [z_dim, obs_dim];
    b3: [1, obs_dim]; cw: [B, 1]; eps: [B, z_dim].

    compute_dtype: matmul-operand dtype.  bf16 is recommended on ALL generations
    (v5e/v6e/v7x MXUs take bf16 natively; accumulation is always f32) — it halves
    the resident weight footprint and the weight DMA.  Elementwise math stays f32.
    approx_transcendentals: use EUP approx reciprocal for logit/sigmoid (default:
    True iff compute_dtype is bf16).
    xrec_dtype: dtype of x_reconst output (default bf16 in the bf16 path; outputs
    are the dominant HBM stream in this bandwidth-bound kernel).
    """
    B, obs_dim = x.shape
    z_dim = w1.shape[1]
    compute_dtype = jnp.dtype(compute_dtype)
    is_bf16 = compute_dtype == jnp.dtype(jnp.bfloat16)
    approx = bool(approx_transcendentals) if approx_transcendentals is not None else is_bf16
    if xrec_dtype is None:
        xrec_dtype = jnp.bfloat16 if is_bf16 else jnp.float32
    xrec_dtype = jnp.dtype(xrec_dtype)

    # Lane-align feature dims: fused-encoder split at z_p and all output stores land
    # on 128-lane tile boundaries (unmasked vst, no cross-lane copies).
    obs_p = _round_up(obs_dim, 128)
    z_p = _round_up(z_dim, 128)

    # ---- VMEM budgeting & batch-tile selection -------------------------------------
    vmem_budget = _vmem_budget_bytes()
    w_bytes = (obs_p * 2 * z_p + z_p * obs_p) * compute_dtype.itemsize + obs_p * 4
    # TODO(synk): for very large obs_dim the (double-buffered) resident w12/w3 can
    # exceed VMEM (esp. v7x's 64 MiB); add a K-tiled ("arbitrary") reduction grid over
    # obs_dim for the encoder matmul in that regime instead of keeping w12 resident.
    per_row = (2 * obs_p * 4 + 2 * z_p * 4 + 2 * 4            # x, eps, scale (x2 buffers)
               + 2 * obs_p * xrec_dtype.itemsize + 4 * z_p * 4  # outputs (x2 buffers)
               + 5 * obs_p * 4 + 6 * z_p * 4)                   # live f32 temporaries
    avail = vmem_budget - 2 * w_bytes - (6 << 20)
    tb_max = max(8, (avail // per_row) // 8 * 8) if avail > per_row * 8 else 8

    tb = min(_round_up(max(block_b, 8), 8), _round_up(B, 8), tb_max)
    if tb >= 128:
        tb = (tb // 128) * 128          # fill the MXU M dimension with aligned tiles
    b_pad = _round_up(B, tb)
    if b_pad // tb == 1 and tb >= 256:
        # Length-1 grids can't be balanced across v7x's 2 TensorCores; split in two
        # (a 2-step grid costs ~0.35 us elsewhere — negligible).
        tb = _round_up(tb // 2, 128)
        b_pad = _round_up(B, tb)
    grid = (b_pad // tb,)

    # ---- prep ops (fused with the pallas_call under this jit) -----------------------
    # Hoist the global reduction: scale = mean(cw)/cw decouples rows -> batch tiling.
    scale = (jnp.mean(cw) / cw).astype(jnp.float32)              # [B, 1]

    def _pad2(a, r, c):
        a = jnp.asarray(a)
        return jnp.pad(a, ((0, r - a.shape[0]), (0, c - a.shape[1])))

    w12 = jnp.concatenate([_pad2(w1, obs_p, z_p), _pad2(w2, obs_p, z_p)],
                          axis=1).astype(compute_dtype)          # [obs_p, 2*z_p]
    w3c = _pad2(w3, z_p, obs_p).astype(compute_dtype)            # [z_p, obs_p]
    b3c = _pad2(jnp.asarray(b3).reshape(1, -1), 1, obs_p).astype(jnp.float32)

    xp = jnp.pad(jnp.asarray(x, jnp.float32),
                 ((0, b_pad - B), (0, obs_p - obs_dim)), constant_values=0.5)
    epsp = jnp.pad(jnp.asarray(eps, jnp.float32),
                   ((0, b_pad - B), (0, z_p - z_dim)))
    scalep = jnp.pad(scale, ((0, b_pad - B), (0, 0)), constant_values=1.0)

    # ---- pallas_call ----------------------------------------------------------------
    kernel = functools.partial(_vae_kernel, approx=approx)

    out_shape = (
        jax.ShapeDtypeStruct((b_pad, obs_p), xrec_dtype),        # x_reconst_mu
        jax.ShapeDtypeStruct((b_pad, z_p), jnp.float32),         # mu
        jax.ShapeDtypeStruct((b_pad, z_p), jnp.float32),         # log_var
    )

    cost = pl.CostEstimate(
        flops=6 * b_pad * obs_p * z_p,
        transcendentals=b_pad * (4 * obs_p + z_p),
        bytes_accessed=int(w_bytes
                           + b_pad * (obs_p * (4 + xrec_dtype.itemsize)
                                      + 3 * z_p * 4 + 4)),
    )

    _row = lambda i: (i, 0)      # batch-tiled arrays
    _rep = lambda i: (0, 0)      # grid-invariant (weight-resident) arrays
    in_specs = [
        pl.BlockSpec((tb, obs_p), _row),              # x
        pl.BlockSpec((obs_p, 2 * z_p), _rep),         # w12 (fused fc1|fc2)
        pl.BlockSpec((z_p, obs_p), _rep),             # w3
        pl.BlockSpec((1, obs_p), _rep),               # b3
        pl.BlockSpec((tb, 1), _row),                  # scale = mean(cw)/cw
        pl.BlockSpec((tb, z_p), _row),                # eps
    ]
    out_specs = (
        pl.BlockSpec((tb, obs_p), _row),
        pl.BlockSpec((tb, z_p), _row),
        pl.BlockSpec((tb, z_p), _row),
    )

    x_rec, mu, log_var = pl.pallas_call(
        kernel,
        grid=grid,
        in_specs=in_specs,
        out_specs=out_specs,
        out_shape=out_shape,
        compiler_params=pltpu.CompilerParams(
            dimension_semantics=("parallel",),
            vmem_limit_bytes=int(vmem_budget)),
        cost_estimate=cost,
    )(xp, w12, w3c, b3c, scalep, epsp)

    return x_rec[:B, :obs_dim], mu[:B, :z_dim], log_var[:B, :z_dim]


def _reference_forward_f64(x, w1, w2, w3, b3, cw, eps):
    """float64 numpy reference mirroring the PyTorch module (precision ground truth)."""
    x, w1, w2, w3, b3, cw, eps = (np.asarray(a, np.float64)
                                  for a in (x, w1, w2, w3, b3, cw, eps))
    xc = np.clip(x, 0.01, 0.99)
    xl = np.log(xc / (1.0 - xc))
    scale = np.mean(cw) / cw
    mu = (xl @ w1) * scale
    log_var = (xl @ w2) * scale
    z = mu + eps * np.exp(log_var / 2.0)
    x_rec = 1.0 / (1.0 + np.exp(-(z @ w3 + b3)))
    return x_rec, mu, log_var


def _assert_close(name, got, want, atol, rtol):
    got = np.asarray(got).astype(np.float64)
    want = np.asarray(want, np.float64)
    ok = np.allclose(got, want, atol=atol, rtol=rtol)
    assert ok, f"{name}: max abs err {np.max(np.abs(got - want))}"


if __name__ == "__main__":
    # Small deterministic shapes; B=20 deliberately isn't a multiple of the batch tile
    # so the grid + row-padding path is exercised.
    B, obs_dim, z_dim = 20, 256, 128

    key = jax.random.PRNGKey(0)
    kx, kcw, k1, k2, k3, kb, keps = jax.random.split(key, 7)

    # Inputs: x in (0, 1), per-cell positive SNP-read weight, reparameterization noise.
    x = jax.random.uniform(kx, (B, obs_dim), jnp.float32, 1e-3, 1.0 - 1e-3)
    cw = jax.random.uniform(kcw, (B, 1), jnp.float32, 0.5, 1.5)
    eps = jax.random.normal(keps, (B, z_dim), jnp.float32)

    # PyTorch-Linear-like uniform(-1/sqrt(fan_in), 1/sqrt(fan_in)) init.
    lim1 = 1.0 / np.sqrt(obs_dim)
    lim3 = 1.0 / np.sqrt(z_dim)
    w1 = jax.random.uniform(k1, (obs_dim, z_dim), jnp.float32, -lim1, lim1)  # fc1 (no bias)
    w2 = jax.random.uniform(k2, (obs_dim, z_dim), jnp.float32, -lim1, lim1)  # fc2 (no bias)
    w3 = jax.random.uniform(k3, (z_dim, obs_dim), jnp.float32, -lim3, lim3)  # fc3 weight
    b3 = jax.random.uniform(kb, (1, obs_dim), jnp.float32, -lim3, lim3)      # fc3 bias

    r_rec, r_mu, r_lv = _reference_forward_f64(x, w1, w2, w3, b3, cw, eps)

    # f32 matmul path, exact transcendentals, small block_b to exercise grid + padding.
    f_rec, f_mu, f_lv = vae_normalized_forward(
        x, w1, w2, w3, b3, cw, eps, block_b=8, compute_dtype=jnp.float32)
    jax.block_until_ready((f_rec, f_mu, f_lv))
    assert f_rec.shape == (B, obs_dim) and f_mu.shape == (B, z_dim) and f_lv.shape == (B, z_dim)
    _assert_close("x_rec(f32)", f_rec, r_rec, 1e-4, 1e-4)
    _assert_close("mu(f32)", f_mu, r_mu, 1e-4, 1e-4)
    _assert_close("log_var(f32)", f_lv, r_lv, 1e-4, 1e-4)

    # Default path: bf16 operands, bf16 x_rec output, approx EUP transcendentals.
    b_rec, b_mu, b_lv = vae_normalized_forward(x, w1, w2, w3, b3, cw, eps)
    jax.block_until_ready((b_rec, b_mu, b_lv))
    assert b_rec.dtype == jnp.bfloat16
    _assert_close("x_rec(bf16)", b_rec, r_rec, 1e-1, 0.0)
    _assert_close("mu(bf16)", b_mu, r_mu, 1e-1, 1e-1)
    _assert_close("log_var(bf16)", b_lv, r_lv, 1e-1, 1e-1)

    print("KERNEL_OK")
</pallas_src>

<mosaic_0001>
module attributes {stable_mosaic.version = 11 : i64} {
  func.func @_vae_kernel(%arg0: i32, %arg1: memref<8x256xf32, #tpu.memory_space<vmem>>, %arg2: memref<256x256xf32, #tpu.memory_space<vmem>>, %arg3: memref<128x256xf32, #tpu.memory_space<vmem>>, %arg4: memref<1x256xf32, #tpu.memory_space<vmem>>, %arg5: memref<8x1xf32, #tpu.memory_space<vmem>>, %arg6: memref<8x128xf32, #tpu.memory_space<vmem>>, %arg7: memref<8x256xf32, #tpu.memory_space<vmem>>, %arg8: memref<8x128xf32, #tpu.memory_space<vmem>>, %arg9: memref<8x128xf32, #tpu.memory_space<vmem>>) attributes {dimension_semantics = [#tpu.dimension_semantics<parallel>], iteration_bounds = array<i64: 3>, scalar_prefetch = 0 : i64, scratch_operands = 0 : i64, tpu.core_type = #tpu.core_type<tc>, window_params = [{transform_indices = @transform_0, window_bounds = array<i64: 8, 256>}, {pipeline_mode = #tpu.pipeline_mode<synchronous>, transform_indices = @transform_1, window_bounds = array<i64: 256, 256>}, {pipeline_mode = #tpu.pipeline_mode<synchronous>, transform_indices = @transform_2, window_bounds = array<i64: 128, 256>}, {pipeline_mode = #tpu.pipeline_mode<synchronous>, transform_indices = @transform_3, window_bounds = array<i64: 1, 256>}, {transform_indices = @transform_4, window_bounds = array<i64: 8, 1>}, {transform_indices = @transform_5, window_bounds = array<i64: 8, 128>}, {transform_indices = @transform_6, window_bounds = array<i64: 8, 256>}, {transform_indices = @transform_7, window_bounds = array<i64: 8, 128>}, {transform_indices = @transform_8, window_bounds = array<i64: 8, 128>}]} {
    %c0 = arith.constant 0 : index
    %c0_0 = arith.constant 0 : index
    %0 = vector.load %arg1[%c0, %c0_0] : memref<8x256xf32, #tpu.memory_space<vmem>>, vector<8x256xf32>
    %cst = arith.constant 0.00999999977 : f32
    %cst_1 = arith.constant 9.900000e-01 : f32
    %1 = vector.broadcast %cst : f32 to vector<8x256xf32>
    %2 = arith.maximumf %1, %0 : vector<8x256xf32>
    %3 = vector.broadcast %cst_1 : f32 to vector<8x256xf32>
    %4 = arith.minimumf %3, %2 : vector<8x256xf32>
    %cst_2 = arith.constant 1.000000e+00 : f32
    %5 = vector.broadcast %cst_2 : f32 to vector<8x256xf32>
    %6 = arith.subf %5, %4 : vector<8x256xf32>
    %7 = arith.divf %4, %6 : vector<8x256xf32>
    %8 = math.log %7 : vector<8x256xf32>
    %c0_3 = arith.constant 0 : index
    %c0_4 = arith.constant 0 : index
    %9 = vector.load %arg2[%c0_3, %c0_4] : memref<256x256xf32, #tpu.memory_space<vmem>>, vector<256x256xf32>
    %cst_5 = arith.constant dense<0.000000e+00> : vector<8x256xf32>
    %10 = tpu.matmul %8, %9, %cst_5 {dimension_numbers = #tpu.dot_dimension_numbers<[1], [0], [0], [1], [0, 0, 1, 1], [], []>} : vector<8x256xf32>, vector<256x256xf32>, vector<8x256xf32> -> vector<8x256xf32>
    %c0_6 = arith.constant 0 : index
    %c0_7 = arith.constant 0 : index
    %11 = vector.load %arg5[%c0_6, %c0_7] : memref<8x1xf32, #tpu.memory_space<vmem>>, vector<8x1xf32>
    %12 = vector.extract_strided_slice %10 {offsets = [0, 0], sizes = [8, 128], strides = [1, 1]} : vector<8x256xf32> to vector<8x128xf32>
    %13 = vector.broadcast %11 : vector<8x1xf32> to vector<8x128xf32>
    %14 = arith.mulf %12, %13 : vector<8x128xf32>
    %15 = vector.extract_strided_slice %10 {offsets = [0, 128], sizes = [8, 128], strides = [1, 1]} : vector<8x256xf32> to vector<8x128xf32>
    %16 = vector.broadcast %11 : vector<8x1xf32> to vector<8x128xf32>
    %17 = arith.mulf %15, %16 : vector<8x128xf32>
    %c0_8 = arith.constant 0 : index
    %c0_9 = arith.constant 0 : index
    %18 = vector.load %arg6[%c0_8, %c0_9] : memref<8x128xf32, #tpu.memory_space<vmem>>, vector<8x128xf32>
    %cst_10 = arith.constant 5.000000e-01 : f32
    %19 = vector.broadcast %cst_10 : f32 to vector<8x128xf32>
    %20 = arith.mulf %17, %19 : vector<8x128xf32>
    %21 = math.exp %20 : vector<8x128xf32>
    %22 = arith.mulf %18, %21 : vector<8x128xf32>
    %23 = arith.addf %14, %22 : vector<8x128xf32>
    %c0_11 = arith.constant 0 : index
    %c0_12 = arith.constant 0 : index
    %24 = vector.load %arg3[%c0_11, %c0_12] : memref<128x256xf32, #tpu.memory_space<vmem>>, vector<128x256xf32>
    %cst_13 = arith.constant dense<0.000000e+00> : vector<8x256xf32>
    %25 = tpu.matmul %23, %24, %cst_13 {dimension_numbers = #tpu.dot_dimension_numbers<[1], [0], [0], [1], [0, 0, 1, 1], [], []>} : vector<8x128xf32>, vector<128x256xf32>, vector<8x256xf32> -> vector<8x256xf32>
    %c0_14 = arith.constant 0 : index
    %c0_15 = arith.constant 0 : index
    %26 = vector.load %arg4[%c0_14, %c0_15] : memref<1x256xf32, #tpu.memory_space<vmem>>, vector<1x256xf32>
    %27 = vector.broadcast %26 : vector<1x256xf32> to vector<8x256xf32>
    %28 = arith.addf %25, %27 : vector<8x256xf32>
    %cst_16 = arith.constant 0.000000e+00 : f32
    %29 = vector.broadcast %cst_16 : f32 to vector<8x256xf32>
    %30 = arith.subf %29, %28 : vector<8x256xf32>
    %31 = math.exp %30 : vector<8x256xf32>
    %cst_17 = arith.constant 1.000000e+00 : f32
    %32 = vector.broadcast %cst_17 : f32 to vector<8x256xf32>
    %33 = arith.addf %32, %31 : vector<8x256xf32>
    %cst_18 = arith.constant 1.000000e+00 : f32
    %34 = vector.broadcast %cst_18 : f32 to vector<8x256xf32>
    %35 = arith.divf %34, %33 : vector<8x256xf32>
    %c0_19 = arith.constant 0 : index
    %c0_20 = arith.constant 0 : index
    %36 = vector.load %arg7[%c0_19, %c0_20] : memref<8x256xf32, #tpu.memory_space<vmem>>, vector<8x256xf32>
    tpu.vector_store %arg7[%c0_19, %c0_20], %35 {strides = array<i32>} : memref<8x256xf32, #tpu.memory_space<vmem>>, vector<8x256xf32>,
    %c0_21 = arith.constant 0 : index
    %c0_22 = arith.constant 0 : index
    %37 = vector.load %arg8[%c0_21, %c0_22] : memref<8x128xf32, #tpu.memory_space<vmem>>, vector<8x128xf32>
    tpu.vector_store %arg8[%c0_21, %c0_22], %14 {strides = array<i32>} : memref<8x128xf32, #tpu.memory_space<vmem>>, vector<8x128xf32>,
    %c0_23 = arith.constant 0 : index
    %c0_24 = arith.constant 0 : index
    %38 = vector.load %arg9[%c0_23, %c0_24] : memref<8x128xf32, #tpu.memory_space<vmem>>, vector<8x128xf32>
    tpu.vector_store %arg9[%c0_23, %c0_24], %17 {strides = array<i32>} : memref<8x128xf32, #tpu.memory_space<vmem>>, vector<8x128xf32>,
    return
  }
  func.func @transform_0(%arg0: i32) -> (i32, i32) {
    %c0_i32 = arith.constant 0 : i32
    %c0_i32_0 = arith.constant 0 : i32
    return %arg0, %c0_i32 : i32, i32
  }
  func.func @transform_1(%arg0: i32) -> (i32, i32) {
    %c0_i32 = arith.constant 0 : i32
    %c0_i32_0 = arith.constant 0 : i32
    %c0_i32_1 = arith.constant 0 : i32
    return %c0_i32, %c0_i32_0 : i32, i32
  }
  func.func @transform_2(%arg0: i32) -> (i32, i32) {
    %c0_i32 = arith.constant 0 : i32
    %c0_i32_0 = arith.constant 0 : i32
    %c0_i32_1 = arith.constant 0 : i32
    return %c0_i32, %c0_i32_0 : i32, i32
  }
  func.func @transform_3(%arg0: i32) -> (i32, i32) {
    %c0_i32 = arith.constant 0 : i32
    %c0_i32_0 = arith.constant 0 : i32
    %c0_i32_1 = arith.constant 0 : i32
    return %c0_i32, %c0_i32_0 : i32, i32
  }
  func.func @transform_4(%arg0: i32) -> (i32, i32) {
    %c0_i32 = arith.constant 0 : i32
    %c0_i32_0 = arith.constant 0 : i32
    return %arg0, %c0_i32 : i32, i32
  }
  func.func @transform_5(%arg0: i32) -> (i32, i32) {
    %c0_i32 = arith.constant 0 : i32
    %c0_i32_0 = arith.constant 0 : i32
    return %arg0, %c0_i32 : i32, i32
  }
  func.func @transform_6(%arg0: i32) -> (i32, i32) {
    %c0_i32 = arith.constant 0 : i32
    %c0_i32_0 = arith.constant 0 : i32
    return %arg0, %c0_i32 : i32, i32
  }
  func.func @transform_7(%arg0: i32) -> (i32, i32) {
    %c0_i32 = arith.constant 0 : i32
    %c0_i32_0 = arith.constant 0 : i32
    return %arg0, %c0_i32 : i32, i32
  }
  func.func @transform_8(%arg0: i32) -> (i32, i32) {
    %c0_i32 = arith.constant 0 : i32
    %c0_i32_0 = arith.constant 0 : i32
    return %arg0, %c0_i32 : i32, i32
  }
}

</mosaic_0001>

<bundles_post_ra>
// kernel: vae_normalized_forward.1
= control target key start
LH: loop header
LB: loop body
LE: loop exit
PB: predicated region body
PF: predicated region fallthrough
CT: control target
= control target key end

     0   :  { %s1614_s0 = inlined_call_operand.vmem [shape: f32[24,256], index: 0, kind: input, shape index: {}]   ;;  %s1615_s1 = inlined_call_operand.vmem [shape: f32[256,256], index: 1, kind: input, shape index: {}]   ;;  %s1616_s2 = inlined_call_operand.vmem [shape: f32[128,256], index: 2, kind: input, shape index: {}]   ;;  %s1617_s3 = inlined_call_operand.vmem [shape: f32[1,256], index: 3, kind: input, shape index: {}]   ;;  %s1618_s4 = inlined_call_operand.vmem [shape: f32[24,1], index: 4, kind: input, shape index: {}]   ;;  %s1619_s5 = inlined_call_operand.vmem [shape: f32[24,128], index: 5, kind: input, shape index: {}]   ;;  %s1620_s6 = inlined_call_operand.hbm [shape: f32[24,256], index: 6, kind: output, shape index: {0}]   ;;  %s1621_s7 = inlined_call_operand.hbm [shape: f32[24,128], index: 7, kind: output, shape index: {1}]   ;;  %s1622_s8 = inlined_call_operand.hbm [shape: f32[24,128], index: 8, kind: output, shape index: {2}]  }
   0x1   :  { %1624 = sst [smem:[#allocation9_spill]] %s1614_s0 }
   0x2   :  { %1625 = sst [smem:[#allocation10_spill]] %s1615_s1 }
   0x3   :  { %1626 = sst [smem:[#allocation11_spill]] %s1616_s2 }
   0x4   :  { %1627 = sst [smem:[#allocation12_spill]] %s1618_s4 }
   0x5   :  { %14 = vsyncpa [#allocation3], 0 }
   0x6   :  { %16 = vsyncpa [#allocation3 + $0x1], 0 }
   0x7   :  { %17 = vsyncpa [#allocation5], 0 }
   0x8   :  { %19 = vsyncpa [#allocation5 + $0x1], 0  ;;  %s1138_s27 = smov 0   ;;  %s1140_s28 = smov 0  }
   0x9   :  { %s1142_s29 = smov 0   ;;  %s1144_s30 = smov 0  }
   0xa LB: > { %s1159_s9 = sadd.s32 4294967295, %s1090_s30   ;;  %s1623_s10 = sadd.s32 4294967294, %s1090_s30   ;;  %s1090_s30 = sphi %s1144_s30, %s1642_s30   ;;  %s1086_s29 = sphi %s1142_s29, %s1641_s29   ;;  %s1082_s28 = sphi %s1140_s28, %s1640_s28   ;;  %s1078_s27 = sphi %s1138_s27, %s1639_s27  }
   0xb   : > { %s1163_s11 = sadd.s32 1, %s1090_s30   ;;  %s173_s12 = sadd.s32 1, %s1086_s29 }
   0xc   : > { %s170_s13 = ssub.s32 %s1090_s30, %s1163_s11  ;;  %p183_p0 = scmp.ne.s32.totalorder %s1086_s29, %s1082_s28 }
   0xd   : > { %p171_p1 = scmp.eq.s32.totalorder %s170_s13, 0  ;;  %p184_p2 = scmp.eq.s32.totalorder %s1159_s9, 2 }
   0xe   : > { %p189_p3 = scmp.ne.s32.totalorder %s1082_s28, %s1078_s27  ;;  %p190_p4 = scmp.eq.s32.totalorder %s1623_s10, 2 }
   0xf   : > { %s1176_s14 = scalar_select %p171_p1, %s1086_s29, %s173_s12  }
  0x10   : > { %p1178_p5 = por %p184_p2, %p183_p0  ;;  %p1182_p6 = por %p190_p4, %p189_p3 }
  0x11   : > { %p880_p7 = scmp.ge.s32.totalorder %s1090_s30, 1  ;;  %p291_p8 = scmp.lt.s32.totalorder %s1090_s30, 4 }
  0x13   : > { %p292_p9 = pnand %p880_p7, %p291_p8 }
  0x14   : > { %s1630_s1 = sld [smem:[#allocation10_spill]] (!%p292_p9)  ;;  %p343_p10 = scmp.lt.s32.totalorder (!%p292_p9), %s1159_s9, 2 }
  0x15   : > { %295 = sbr.rel (%p292_p9) target bundleno = 389 (0x185), region = 44  ;;  %s1631_s0 = sld [smem:[#allocation9_spill]] (!%p292_p9) }
  0x16   : > { %s1632_s4 = sld [smem:[#allocation12_spill]] (!%p292_p9)  ;;  %s1532_s24 = sand.u32 (!%p292_p9), 1, %s1082_s28  }
  0x17   : > { %s1633_s2 = sld [smem:[#allocation11_spill]] (!%p292_p9)  ;;  %s882_s26 = sshll.u32 (!%p292_p9), %s1532_s24, 3 }
  0x18   : > { %s335_s12 = scalar_lea.vmem (!%p292_p9), [#allocation4], %s882_s26  ;;  %s1535_s13 = scalar_lea.vmem (!%p292_p9), [#allocation6], %s882_s26 }
  0x1a   : > { %v429_v0 = vld [vmem:[%s1630_s1 + $0xf8] sm:$0xff]  ;;  %v427_v2 = vld [vmem:[%s1630_s1 + $0xe8] sm:$0xff]  ;;  %v428_v6 = vld [vmem:[%s1630_s1 + $0xf0] sm:$0xff]  ;;  %s1258_s25 = scalar_select %p343_p10, %s1159_s9, 2 }
  0x1b   : > { %v461_v1 = vld [vmem:[%s1630_s1 + $0x1f8] sm:$0xff]  ;;  %502 = vmatpush.msra.mxu2 %v429_v0  ;;  %v459_v3 = vld [vmem:[%s1630_s1 + $0x1e8] sm:$0xff]  ;;  %v460_v7 = vld [vmem:[%s1630_s1 + $0x1f0] sm:$0xff]  ;;  %462 = vmatpush.msra.mxu0 %v428_v6 }
  0x1c   : > { %522 = vmatpush.msra.mxu3 %v461_v1  ;;  %v425_v4 = vld [vmem:[%s1630_s1 + $0xd8] sm:$0xff]  ;;  %v426_v8 = vld [vmem:[%s1630_s1 + $0xe0] sm:$0xff]  ;;  %482 = vmatpush.msra.mxu1 %v460_v7  ;;  %v423_v10 = vld [vmem:[%s1630_s1 + $0xc8] sm:$0xff]  ;;  %s897_s19 = sshll.u32 %s1258_s25, 4  ;;  %s886_s18 = sshll.u32 %s1258_s25, 3 }
  0x1d   : > { %v457_v5 = vld [vmem:[%s1630_s1 + $0x1d8] sm:$0xff]  ;;  %503 = vmatpush.msra.mxu2 %v427_v2  ;;  %v458_v9 = vld [vmem:[%s1630_s1 + $0x1e0] sm:$0xff]  ;;  %v455_v11 = vld [vmem:[%s1630_s1 + $0x1c8] sm:$0xff]  ;;  %463 = vmatpush.msra.mxu0 %v426_v8  ;;  %s347_s10 = scalar_lea.vmem %s1631_s0, %s897_s19  ;;  %s351_s19 = scalar_lea.vmem %s1632_s4, %s886_s18 }
  0x1e   : > { %523 = vmatpush.msra.mxu3 %v459_v3  ;;  %v424_v12 = vld [vmem:[%s1630_s1 + $0xd0] sm:$0xff]  ;;  %483 = vmatpush.msra.mxu1 %v458_v9  ;;  %v421_v14 = vld [vmem:[%s1630_s1 + $0xb8] sm:$0xff]  ;;  %v422_v16 = vld [vmem:[%s1630_s1 + $0xc0] sm:$0xff]  ;;  %s355_s21 = scalar_lea.vmem %s1619_s5, %s886_s18  ;;  %s714_s0 = sshll.u32 %s335_s12, 4  ;;  %s715_s0 = int_to_ptr.vmem [resolvable:$true] %s714_s0 }
  0x1f   : > { %504 = vmatpush.msra.mxu2 %v425_v4  ;;  %v456_v13 = vld [vmem:[%s1630_s1 + $0x1d0] sm:$0xff]  ;;  %v453_v15 = vld [vmem:[%s1630_s1 + $0x1b8] sm:$0xff]  ;;  %v454_v17 = vld [vmem:[%s1630_s1 + $0x1c0] sm:$0xff]  ;;  %464 = vmatpush.msra.mxu0 %v424_v12 }
  0x20   : > { %524 = vmatpush.msra.mxu3 %v457_v5  ;;  %484 = vmatpush.msra.mxu1 %v456_v13  ;;  %v419_v18 = vld [vmem:[%s1630_s1 + $0xa8] sm:$0xff]  ;;  %v420_v20 = vld [vmem:[%s1630_s1 + $0xb0] sm:$0xff]  ;;  %v417_v22 = vld [vmem:[%s1630_s1 + $0x98] sm:$0xff]  ;;  %v1092_v13 = vmov 0  }
  0x21   : > { %505 = vmatpush.msra.mxu2 %v423_v10  ;;  %v451_v19 = vld [vmem:[%s1630_s1 + $0x1a8] sm:$0xff]  ;;  %v452_v21 = vld [vmem:[%s1630_s1 + $0x1b0] sm:$0xff]  ;;  %465 = vmatpush.msra.mxu0 %v422_v16  ;;  %v449_v23 = vld [vmem:[%s1630_s1 + $0x198] sm:$0xff] }
  0x22   : > { %525 = vmatpush.msra.mxu3 %v455_v11  ;;  %485 = vmatpush.msra.mxu1 %v454_v17  ;;  %v418_v24 = vld [vmem:[%s1630_s1 + $0xa0] sm:$0xff]  ;;  %v415_v26 = vld [vmem:[%s1630_s1 + $0x88] sm:$0xff]  ;;  %v416_v28 = vld [vmem:[%s1630_s1 + $0x90] sm:$0xff] }
  0x23   : > { %506 = vmatpush.msra.mxu2 %v421_v14  ;;  %v450_v25 = vld [vmem:[%s1630_s1 + $0x1a0] sm:$0xff]  ;;  %466 = vmatpush.msra.mxu0 %v420_v20  ;;  %v447_v27 = vld [vmem:[%s1630_s1 + $0x188] sm:$0xff]  ;;  %v448_v29 = vld [vmem:[%s1630_s1 + $0x190] sm:$0xff] }
  0x24   : > { %526 = vmatpush.msra.mxu3 %v453_v15  ;;  %486 = vmatpush.msra.mxu1 %v452_v21  ;;  %v413_v30 = vld [vmem:[%s1630_s1 + $0x78] sm:$0xff]  ;;  %v414_v32 = vld [vmem:[%s1630_s1 + $0x80] sm:$0xff]  ;;  %v411_v34 = vld [vmem:[%s1630_s1 + $0x68] sm:$0xff] }
  0x25   : > { %507 = vmatpush.msra.mxu2 %v419_v18  ;;  %467 = vmatpush.msra.mxu0 %v418_v24  ;;  %v445_v31 = vld [vmem:[%s1630_s1 + $0x178] sm:$0xff]  ;;  %v446_v33 = vld [vmem:[%s1630_s1 + $0x180] sm:$0xff]  ;;  %v443_v35 = vld [vmem:[%s1630_s1 + $0x168] sm:$0xff] }
  0x26   : > { %527 = vmatpush.msra.mxu3 %v451_v19  ;;  %487 = vmatpush.msra.mxu1 %v450_v25  ;;  %v412_v36 = vld [vmem:[%s1630_s1 + $0x70] sm:$0xff]  ;;  %v409_v38 = vld [vmem:[%s1630_s1 + $0x58] sm:$0xff]  ;;  %v410_v40 = vld [vmem:[%s1630_s1 + $0x60] sm:$0xff] }
  0x27   : > { %508 = vmatpush.msra.mxu2 %v417_v22  ;;  %468 = vmatpush.msra.mxu0 %v416_v28  ;;  %v444_v37 = vld [vmem:[%s1630_s1 + $0x170] sm:$0xff]  ;;  %v441_v39 = vld [vmem:[%s1630_s1 + $0x158] sm:$0xff]  ;;  %v442_v41 = vld [vmem:[%s1630_s1 + $0x160] sm:$0xff] }
  0x28   : > { %528 = vmatpush.msra.mxu3 %v449_v23  ;;  %488 = vmatpush.msra.mxu1 %v448_v29  ;;  %v356_v42 = vld [vmem:[%s347_s10] sm:$0xff]  ;;  %v357_v43 = vld [vmem:[%s347_s10 + $0x8] sm:$0xff]  ;;  %v408_v48 = vld [vmem:[%s1630_s1 + $0x50] sm:$0xff]  ;;  %s681_s10 = sand.u32 1, %s1159_s9  }
  0x29   : > { %509 = vmatpush.msra.mxu2 %v415_v26  ;;  %469 = vmatpush.msra.mxu0 %v414_v32  ;;  %v407_v44 = vld [vmem:[%s1630_s1 + $0x48] sm:$0xff]  ;;  %v358_v46 = vmax.f32 %v356_v42, 0.01  ;;  %v359_v47 = vmax.f32 %v357_v43, 0.01  ;;  %v440_v49 = vld [vmem:[%s1630_s1 + $0x150] sm:$0xff] }
  0x2a   : > { %529 = vmatpush.msra.mxu3 %v447_v27  ;;  %489 = vmatpush.msra.mxu1 %v446_v33  ;;  %v439_v45 = vld [vmem:[%s1630_s1 + $0x148] sm:$0xff]  ;;  %v405_v50 = vld [vmem:[%s1630_s1 + $0x38] sm:$0xff]  ;;  %v406_v54 = vld [vmem:[%s1630_s1 + $0x40] sm:$0xff]  ;;  %s1548_s25 = scalar_lea.sflag [#allocation5], %s681_s10 }
  0x2b   : > { %510 = vmatpush.msra.mxu2 %v413_v30  ;;  %470 = vmatpush.msra.mxu0 %v412_v36  ;;  %v437_v51 = vld [vmem:[%s1630_s1 + $0x138] sm:$0xff]  ;;  %v1342_v52 = vmin.f32 %v358_v46, 0.99  ;;  %v1344_v53 = vmin.f32 %v359_v47, 0.99  ;;  %v438_v55 = vld [vmem:[%s1630_s1 + $0x140] sm:$0xff] }
  0x2c   : > { %530 = vmatpush.msra.mxu3 %v445_v31  ;;  %490 = vmatpush.msra.mxu1 %v444_v37  ;;  %v403_v56 = vld [vmem:[%s1630_s1 + $0x28] sm:$0xff]  ;;  %v404_v60 = vld [vmem:[%s1630_s1 + $0x30] sm:$0xff]  ;;  %v401_v62 = vld [vmem:[%s1630_s1 + $0x18] sm:$0xff] }
  0x2d   : > { %511 = vmatpush.msra.mxu2 %v411_v34  ;;  %471 = vmatpush.msra.mxu0 %v410_v40  ;;  %v435_v57 = vld [vmem:[%s1630_s1 + $0x128] sm:$0xff]  ;;  %v1359_v58 = vsub.f32 1.0, %v1342_v52  ;;  %v1362_v59 = vsub.f32 1.0, %v1344_v53  ;;  %v436_v61 = vld [vmem:[%s1630_s1 + $0x130] sm:$0xff]  ;;  %v433_v63 = vld [vmem:[%s1630_s1 + $0x118] sm:$0xff] }
  0x2e   : > { %531 = vmatpush.msra.mxu3 %v443_v35  ;;  %491 = vmatpush.msra.mxu1 %v442_v41  ;;  %v402_v0 = vld [vmem:[%s1630_s1 + $0x20] sm:$0xff]  ;;  %v399_v2 = vld [vmem:[%s1630_s1 + $0x8] sm:$0xff]  ;;  %v400_v4 = vld [vmem:[%s1630_s1 + $0x10] sm:$0xff] }
  0x2f   : > { %512 = vmatpush.msra.mxu2 %v409_v38  ;;  %472 = vmatpush.msra.mxu0 %v408_v48  ;;  %950 = vrcp.f32 %v1359_v58  ;;  %v434_v1 = vld [vmem:[%s1630_s1 + $0x120] sm:$0xff]  ;;  %v431_v3 = vld [vmem:[%s1630_s1 + $0x108] sm:$0xff]  ;;  %v432_v5 = vld [vmem:[%s1630_s1 + $0x110] sm:$0xff]  ;;  %vm369_vm0 = vweird.f32 %v1359_v58  ;;  %v375_v15 = vand.u32 2147483648, %v1359_v58  ;;  %v373_v19 = vand.u32 2147483647, %v1359_v58 }
  0x30   : > { %532 = vmatpush.msra.mxu3 %v441_v39  ;;  %492 = vmatpush.msra.mxu1 %v440_v49  ;;  %952 = vrcp.f32 %v1362_v59  ;;  %v398_v6 = vld [vmem:[%s1630_s1] sm:$0xff]  ;;  %v586_v10 = vld [vmem:[%s1633_s2 + $0xf0] sm:$0xff]  ;;  %v587_v14 = vld [vmem:[%s1633_s2 + $0xf8] sm:$0xff]  ;;  %v390_v20 = vand.u32 2147483648, %v1362_v59  ;;  %vm384_vm2 = vweird.f32 %v1362_v59  ;;  %v388_v23 = vand.u32 2147483647, %v1362_v59 }
  0x31   : > { %513 = vmatpush.msra.mxu2 %v407_v44  ;;  %473 = vmatpush.msra.mxu0 %v406_v54  ;;  %v430_v7 = vld [vmem:[%s1630_s1 + $0x100] sm:$0xff]  ;;  %v585_v21 = vld [vmem:[%s1633_s2 + $0xe8] sm:$0xff]  ;;  %v582_v24 = vld [vmem:[%s1633_s2 + $0xd0] sm:$0xff]  ;;  %v376_v28 = vor.u32 1.1754944e-38, %v375_v15  ;;  %vm374_vm5 = vcmp.eq.f32.partialorder %v373_v19, 8.507059e+37 }
  0x32   : > { %533 = vmatpush.msra.mxu3 %v439_v45  ;;  %493 = vmatpush.msra.mxu1 %v438_v55  ;;  %v542_v9 = vld [vmem:[%s351_s19] sm:$0xff]  ;;  %v583_v26 = vld [vmem:[%s1633_s2 + $0xd8] sm:$0xff]  ;;  %v391_v33 = vor.u32 1.1754944e-38, %v390_v20  ;;  %v581_v34 = vld [vmem:[%s1633_s2 + $0xc8] sm:$0xff]  ;;  %vm389_vm7 = vcmp.eq.f32.partialorder %v388_v23, 8.507059e+37  ;;  %s893_s19 = sshll.u32 %s1159_s9, 3 }
  0x33   : > { %514 = vmatpush.msra.mxu2 %v405_v50  ;;  %474 = vmatpush.msra.mxu0 %v404_v60  ;;  %v584_v17 = vld [vmem:[%s1633_s2 + $0xe0] sm:$0xff]  ;;  %v578_v36 = vld [vmem:[%s1633_s2 + $0xb0] sm:$0xff]  ;;  %v579_v38 = vld [vmem:[%s1633_s2 + $0xb8] sm:$0xff]  ;;  %s712_s26 = scalar_lea.hbm %s1621_s7, %s893_s19 }
  0x34   : > { %534 = vmatpush.msra.mxu3 %v437_v51  ;;  %494 = vmatpush.msra.mxu1 %v436_v61  ;;  %v580_v30 = vld [vmem:[%s1633_s2 + $0xc0] sm:$0xff]  ;;  %v577_v44 = vld [vmem:[%s1633_s2 + $0xa8] sm:$0xff]  ;;  %v574_v50 = vld [vmem:[%s1633_s2 + $0x90] sm:$0xff]  ;;  %s716_s1 = sshll.u32 %s712_s26, 4  ;;  %s717_s1 = int_to_ptr.hbm [resolvable:$true] %s716_s1 }
  0x35   : > { %515 = vmatpush.msra.mxu2 %v403_v56  ;;  %475 = vmatpush.msra.mxu0 %v402_v0  ;;  %v951_v8 = vpop.eup %950  ;;  %v576_v41 = vld [vmem:[%s1633_s2 + $0xa0] sm:$0xff]  ;;  %v575_v51 = vld [vmem:[%s1633_s2 + $0x98] sm:$0xff]  ;;  %v570_v54 = vld [vmem:[%s1633_s2 + $0x70] sm:$0xff]  ;;  %s982_s18 = sshra.s32 %s717_s1, 4  ;;  %s983_s18 = int_to_ptr.hbm [resolvable:$true] %s982_s18 }
  0x36   : > { %535 = vmatpush.msra.mxu3 %v435_v57  ;;  %495 = vmatpush.msra.mxu1 %v434_v1  ;;  %v953_v11 = vpop.eup %952  ;;  %v365_v12 = vmul.f32 %v951_v8, %v1359_v58  ;;  %vm370_vm1 = vweird.f32 %v951_v8  ;;  %v571_v55 = vld [vmem:[%s1633_s2 + $0x78] sm:$0xff]  ;;  %v568_v56 = vld [vmem:[%s1633_s2 + $0x60] sm:$0xff]  ;;  %v569_v57 = vld [vmem:[%s1633_s2 + $0x68] sm:$0xff]  ;;  %s984_s17 = scalar_lea.hbm %s983_s18, 8  ;;  %p989_p0 = scmp.lt.s32.totalorder %s983_s18, %s1621_s7 }
  0x37   : > { %516 = vmatpush.msra.mxu2 %v401_v62  ;;  %476 = vmatpush.msra.mxu0 %v400_v4  ;;  %v380_v16 = vmul.f32 %v953_v11, %v1362_v59  ;;  %vm385_vm3 = vweird.f32 %v953_v11  ;;  %vm1437_vm4 = vmor %vm369_vm0, %vm370_vm1  ;;  %v566_v58 = vld [vmem:[%s1633_s2 + $0x50] sm:$0xff]  ;;  %v567_v59 = vld [vmem:[%s1633_s2 + $0x58] sm:$0xff]  ;;  %p985_p11 = scmp.ne.s32.totalorder %s983_s18, %s984_s17 }
  0x38   : > { %536 = vmatpush.msra.mxu3 %v433_v63  ;;  %496 = vmatpush.msra.mxu1 %v432_v5  ;;  %v366_v18 = vsub.f32 1.0, %v365_v12  ;;  %vm1446_vm6 = vmor %vm384_vm2, %vm385_vm3  ;;  %v564_v60 = vld [vmem:[%s1633_s2 + $0x40] sm:$0xff]  ;;  %v565_v61 = vld [vmem:[%s1633_s2 + $0x48] sm:$0xff] }
  0x39   : > { %517 = vmatpush.msra.mxu2 %v399_v2  ;;  %949 = vset.pattern.permute.xlu0 %v1092_v13  ;;  %v381_v22 = vsub.f32 1.0, %v380_v16  ;;  %v562_v62 = vld [vmem:[%s1633_s2 + $0x30] sm:$0xff]  ;;  %v563_v63 = vld [vmem:[%s1633_s2 + $0x38] sm:$0xff]  ;;  %v560_v0 = vld [vmem:[%s1633_s2 + $0x20] sm:$0xff]  ;;  %p986_p12 = pnand %p985_p11, %p1178_p5 }
  0x3a   : > { %537 = vmatpush.msra.mxu3 %v431_v3  ;;  %477 = vmatpush.msra.mxu0 %v398_v6  ;;  %v367_v25 = vmul.f32 %v951_v8, %v366_v18  ;;  %v561_v1 = vld [vmem:[%s1633_s2 + $0x28] sm:$0xff]  ;;  %v558_v2 = vld [vmem:[%s1633_s2 + $0x10] sm:$0xff]  ;;  %v559_v3 = vld [vmem:[%s1633_s2 + $0x18] sm:$0xff] }
  0x3b   : > { %497 = vmatpush.msra.mxu1 %v430_v7  ;;  %545 = vperm.xlu0 %949, %v542_v9   ;;  %v382_v29 = vmul.f32 %v953_v11, %v381_v22  ;;  %v556_v4 = vld [vmem:[%s1633_s2] sm:$0xff]  ;;  %v557_v5 = vld [vmem:[%s1633_s2 + $0x8] sm:$0xff]  ;;  %p987_p13 = pneg %p986_p12 }
  0x3c   : > { %594 = vmatpush.msrb.mxu0 %v586_v10  ;;  %v368_v31 = vadd.f32 %v951_v8, %v367_v25 }
  0x3d   : > { %614 = vmatpush.msrb.mxu1 %v587_v14  ;;  %v383_v35 = vadd.f32 %v953_v11, %v382_v29 }
  0x3e   : > { %595 = vmatpush.msrb.mxu0 %v584_v17  ;;  %v372_v37 = vsel %vm1437_vm4, %v951_v8, %v368_v31  ;;  %v550_v17 = vld [vmem:[%s355_s21] sm:$0xff] }
  0x3f   : > { %615 = vmatpush.msrb.mxu1 %v585_v21  ;;  %v377_v39 = vsel %vm374_vm5, %v376_v28, %v372_v37  ;;  %v387_v40 = vsel %vm1446_vm6, %v953_v11, %v383_v35 }
  0x40   : > { %596 = vmatpush.msrb.mxu0 %v582_v24  ;;  %v378_v42 = vmul.f32 %v377_v39, %v1342_v52  ;;  %v392_v43 = vsel %vm389_vm7, %v391_v33, %v387_v40  ;;  %v572_v52 = vld [vmem:[%s1633_s2 + $0x80] sm:$0xff] }
  0x41   : > { %616 = vmatpush.msrb.mxu1 %v583_v26  ;;  %v393_v45 = vmul.f32 %v392_v43, %v1344_v53  ;;  %v573_v53 = vld [vmem:[%s1633_s2 + $0x88] sm:$0xff]  ;;  %s988_s2 = scalar_lea.hbm %s1621_s7, 24 }
  0x42   : > { %597 = vmatpush.msrb.mxu0 %v580_v30  ;;  %954 = vlog2.f32 %v378_v42  ;;  %p990_p1 = scmp.lt.s32.totalorder %s988_s2, %s984_s17 }
  0x43   : > { %617 = vmatpush.msrb.mxu1 %v581_v34  ;;  %956 = vlog2.f32 %v393_v45 }
  0x44   : > { %598 = vmatpush.msrb.mxu0 %v578_v36  ;;  %p991_p2 = por %p990_p1, %p989_p0 }
  0x45   : > { %618 = vmatpush.msrb.mxu1 %v579_v38 }
  0x46   : > { %599 = vmatpush.msrb.mxu0 %v576_v41  ;;  %p992_p3 = pnand %p991_p2, %p987_p13 }
  0x47   : > { %619 = vmatpush.msrb.mxu1 %v577_v44 }
  0x48   : > { %v955_v46 = vpop.eup %954  ;;  %600 = vmatpush.msrb.mxu0 %v574_v50 }
  0x49   : > { %v957_v47 = vpop.eup %956  ;;  %v395_v48 = vmul.f32 0.6931472, %v955_v46  ;;  %620 = vmatpush.msrb.mxu1 %v575_v51 }
  0x4a   : > { %v397_v49 = vmul.f32 0.6931472, %v957_v47  ;;  %601 = vmatpush.msrb.mxu0 %v572_v52 }
  0x4b   : > { %518 = vmatmul.f32.vlgmr.msra.gmra.mxu2 %v395_v48  ;;  %478 = vmatmul.f32.vlgmr.msra.gmra.mxu0 %v395_v48 }
  0x4c   : > { %538 = vmatmul.f32.vlgmr.msra.gmra.mxu3 %v397_v49  ;;  %498 = vmatmul.f32.vlgmr.msra.gmra.mxu1 %v397_v49 }
  0x4d   : > { %621 = vmatpush.msrb.mxu1 %v573_v53  ;;  %602 = vmatpush.msrb.mxu0 %v570_v54 }
  0x4f   : > { %622 = vmatpush.msrb.mxu1 %v571_v55  ;;  %603 = vmatpush.msrb.mxu0 %v568_v56 }
  0x51   : > { %623 = vmatpush.msrb.mxu1 %v569_v57  ;;  %604 = vmatpush.msrb.mxu0 %v566_v58 }
  0x53   : > { %624 = vmatpush.msrb.mxu1 %v567_v59  ;;  %605 = vmatpush.msrb.mxu0 %v564_v60 }
  0x55   : > { %625 = vmatpush.msrb.mxu1 %v565_v61  ;;  %606 = vmatpush.msrb.mxu0 %v562_v62 }
  0x57   : > { %626 = vmatpush.msrb.mxu1 %v563_v63  ;;  %607 = vmatpush.msrb.mxu0 %v560_v0 }
  0x59   : > { %627 = vmatpush.msrb.mxu1 %v561_v1  ;;  %608 = vmatpush.msrb.mxu0 %v558_v2 }
  0x5b   : > { %628 = vmatpush.msrb.mxu1 %v559_v3  ;;  %609 = vmatpush.msrb.mxu0 %v556_v4 }
  0x5d   : > { %629 = vmatpush.msrb.mxu1 %v557_v5 }
  0xad   : > { %v546_v8 = vpop.permute.xlu0 %545 }
  0xc8   : > { %v479_v6 = vpop.f32.mrf.mxu0 }
  0xc9   : > { %v499_v7 = vpop.f32.mrf.mxu1 }
  0xca   : > { %v500_v9 = vadd.f32 %v499_v7, %v479_v6 }
  0xcc   : > { %v548_v10 = vmul.f32 %v546_v8, %v500_v9 }
  0xce   : > { %v519_v11 = vpop.f32.mrf.mxu2  ;;  %674 = vst [vmem:[%s335_s12] sm:$0xff] %v548_v10 }
  0xcf   : > { %v539_v12 = vpop.f32.mrf.mxu3 }
  0xd0   : > { %v540_v13 = vadd.f32 %v539_v12, %v519_v11 }
  0xd2   : > { %v549_v14 = vmul.f32 %v546_v8, %v540_v13 }
  0xd4   : > { %v551_v15 = vmul.f32 0.5, %v549_v14  ;;  %675 = vst [vmem:[%s1535_s13] sm:$0xff] %v549_v14 }
  0xd6   : > { %v552_v16 = vmul.f32 1.442695, %v551_v15 }
  0xd8   : > { %958 = vpow2.f32 %v552_v16 }
  0xde   : > { %v959_v18 = vpop.eup %958 }
  0xdf   : > { %v554_v19 = vmul.f32 %v959_v18, %v550_v17 }
  0xe1   : > { %v555_v20 = vadd.f32 %v554_v19, %v548_v10 }
  0xe3   : > { %610 = vmatmul.f32.vlgmr.msrb.gmra.mxu0 %v555_v20  ;;  %630 = vmatmul.f32.vlgmr.msrb.gmra.mxu1 %v555_v20 }
  0xe4   : > { %995 = shalt.err (!%p992_p3)
}
  0xe5   : > { %900 = dma.vmem_to_hbm [thread:$0]  (%p1178_p5), %s715_s0, 128, %s717_s1, %s1548_s25  }
  0xe6   : > { %s728_s12 = sshll.u32 %s1535_s13, 4  ;;  %s726_s26 = scalar_lea.hbm %s1622_s8, %s893_s19  ;;  %s729_s12 = int_to_ptr.vmem [resolvable:$true] %s728_s12 }
  0xe7   : > { %s730_s20 = sshll.u32 %s726_s26, 4  ;;  %s1016_s21 = scalar_lea.hbm %s1622_s8, 24  ;;  %s731_s20 = int_to_ptr.hbm [resolvable:$true] %s730_s20 }
  0xe8   : > { %s1010_s4 = sshra.s32 %s731_s20, 4  ;;  %s1011_s4 = int_to_ptr.hbm [resolvable:$true] %s1010_s4 }
  0xe9   : > { %s1012_s2 = scalar_lea.hbm %s1011_s4, 8  ;;  %p1017_p9 = scmp.lt.s32.totalorder %s1011_s4, %s1622_s8 }
  0xea   : > { %p1013_p4 = scmp.ne.s32.totalorder %s1011_s4, %s1012_s2  ;;  %p1018_p10 = scmp.lt.s32.totalorder %s1016_s21, %s1012_s2 }
  0xec   : > { %p1014_p7 = pnand %p1013_p4, %p1178_p5  ;;  %p1019_p11 = por %p1018_p10, %p1017_p9 }
  0xee   : > { %p1015_p8 = pneg %p1014_p7 }
  0xf0   : > { %p1020_p12 = pnand %p1019_p11, %p1015_p8 }
  0xf2   : > { %1023 = shalt.err (!%p1020_p12)
}
  0xf3   : > { %901 = dma.vmem_to_hbm [thread:$0]  (%p1178_p5), %s729_s12, 128, %s731_s20, %s1548_s25   ;;  %v588_v21 = vld [vmem:[%s1617_s3] sm:$0x3] }
  0xf4   : > { %v590_v22 = vperm.slane %v588_v21, 0  ;;  %v591_v23 = vperm.slane %v588_v21, 1  ;;  %s881_s25 = sshll.u32 %s1532_s24, 4  ;;  %s898_s22 = sshll.u32 %s1159_s9, 4 }
  0xf5   : > { %s698_s23 = scalar_lea.hbm %s1620_s6, %s898_s22  ;;  %s328_s26 = scalar_lea.vmem [#allocation2], %s881_s25 }
  0xf6   : > { %s700_s20 = sshll.u32 %s328_s26, 4  ;;  %s702_s9 = sshll.u32 %s698_s23, 4  ;;  %s701_s20 = int_to_ptr.vmem [resolvable:$true] %s700_s20  ;;  %s703_s9 = int_to_ptr.hbm [resolvable:$true] %s702_s9 }
  0xf7   : > { %s677_s4 = scalar_lea.sflag [#allocation3], %s1532_s24  ;;  %s1038_s2 = sshra.s32 %s703_s9, 4  ;;  %s1039_s2 = int_to_ptr.hbm [resolvable:$true] %s1038_s2 }
  0xf8   : > { %s1040_s18 = scalar_lea.hbm %s1039_s2, 16  ;;  %s1044_s0 = scalar_lea.hbm %s1620_s6, 48 }
  0xf9   : > { %p1041_p13 = scmp.ne.s32.totalorder %s1039_s2, %s1040_s18  ;;  %p1045_p2 = scmp.lt.s32.totalorder %s1039_s2, %s1620_s6 }
  0xfa   : > { %p1046_p3 = scmp.lt.s32.totalorder %s1044_s0, %s1040_s18 }
  0xfb   : > { %p1042_p0 = pnand %p1041_p13, %p1178_p5 }
  0xfc   : > { %p1047_p4 = por %p1046_p3, %p1045_p2 }
  0xfd   : > { %p1043_p1 = pneg %p1042_p0 }
  0xff   : > { %p1048_p7 = pnand %p1047_p4, %p1043_p1 }
 0x160   : > { %v611_v24 = vpop.f32.mrf.mxu0  ;;  %v631_v25 = vpop.f32.mrf.mxu1 }
 0x161   : > { %v612_v26 = vadd.f32 %v611_v24, %v590_v22  ;;  %v632_v27 = vadd.f32 %v631_v25, %v591_v23 }
 0x163   : > { %v634_v28 = vsub.f32 0.0, %v612_v26  ;;  %v635_v29 = vsub.f32 0.0, %v632_v27 }
 0x165   : > { %v636_v30 = vmul.f32 1.442695, %v634_v28  ;;  %v638_v31 = vmul.f32 1.442695, %v635_v29 }
 0x167   : > { %960 = vpow2.f32 %v636_v30 }
 0x168   : > { %962 = vpow2.f32 %v638_v31 }
 0x16d   : > { %v961_v32 = vpop.eup %960 }
 0x16e   : > { %v963_v33 = vpop.eup %962  ;;  %v640_v34 = vadd.f32 1.0, %v961_v32 }
 0x16f   : > { %v641_v35 = vadd.f32 1.0, %v963_v33 }
 0x170   : > { %964 = vrcp.f32 %v640_v34  ;;  %v653_v42 = vand.u32 2147483648, %v640_v34  ;;  %v651_v44 = vand.u32 2147483647, %v640_v34  ;;  %vm647_vm10 = vweird.f32 %v640_v34 }
 0x171   : > { %966 = vrcp.f32 %v641_v35  ;;  %v668_v45 = vand.u32 2147483648, %v641_v35  ;;  %v666_v47 = vand.u32 2147483647, %v641_v35  ;;  %vm662_vm12 = vweird.f32 %v641_v35 }
 0x172   : > { %v654_v49 = vor.u32 1.1754944e-38, %v653_v42  ;;  %vm652_vm13 = vcmp.eq.f32.partialorder %v651_v44, 8.507059e+37 }
 0x173   : > { %v669_v52 = vor.u32 1.1754944e-38, %v668_v45  ;;  %vm667_vm15 = vcmp.eq.f32.partialorder %v666_v47, 8.507059e+37 }
 0x176   : > { %v965_v36 = vpop.eup %964 }
 0x177   : > { %v967_v37 = vpop.eup %966  ;;  %v643_v38 = vmul.f32 %v965_v36, %v640_v34  ;;  %vm648_vm8 = vweird.f32 %v965_v36 }
 0x178   : > { %v658_v39 = vmul.f32 %v967_v37, %v641_v35  ;;  %vm663_vm9 = vweird.f32 %v967_v37  ;;  %vm649_vm11 = vmor %vm647_vm10, %vm648_vm8 }
 0x179   : > { %v644_v40 = vsub.f32 1.0, %v643_v38  ;;  %vm664_vm14 = vmor %vm662_vm12, %vm663_vm9 }
 0x17a   : > { %v659_v41 = vsub.f32 1.0, %v658_v39 }
 0x17b   : > { %v645_v43 = vmul.f32 %v965_v36, %v644_v40 }
 0x17c   : > { %v660_v46 = vmul.f32 %v967_v37, %v659_v41 }
 0x17d   : > { %v646_v48 = vadd.f32 %v965_v36, %v645_v43 }
 0x17e   : > { %v661_v50 = vadd.f32 %v967_v37, %v660_v46 }
 0x17f   : > { %v650_v51 = vsel %vm649_vm11, %v965_v36, %v646_v48 }
 0x180   : > { %v655_v53 = vsel %vm652_vm13, %v654_v49, %v650_v51  ;;  %v665_v54 = vsel %vm664_vm14, %v967_v37, %v661_v50 }
 0x181   : > { %v670_v55 = vsel %vm667_vm15, %v669_v52, %v665_v54  ;;  %672 = vst [vmem:[%s328_s26] sm:$0xff] %v655_v53 }
 0x182   : > { %673 = vst [vmem:[%s328_s26 + $0x8] sm:$0xff] %v670_v55 }
 0x183   : > { %1051 = shalt.err (!%p1048_p7)
}
 0x184   : > { %899 = dma.vmem_to_hbm [thread:$0]  (%p1178_p5), %s701_s20, 256, %s703_s9, %s677_s4  }
 0x185 PF: > { %p915_p8 = scmp.ge.s32.totalorder %s1090_s30, 2  ;;  %s742_s24 = sand.u32 1, %s1078_s27  }
 0x186   : > { %s743_s19 = scalar_lea.sflag [#allocation3], %s742_s24 }
 0x187   : > { %p906_p9 = pnand %p915_p8, %p1182_p6 }
 0x189   : > { %p907_p10 = pneg %p906_p9 }
 0x18b   : > { %1069 = dma.done.wait (%p907_p10), %s743_s19, 256  }
 0x18c   : > { %1071 = vsyncadd (%p907_p10), %s743_s19, 4294967040  ;;  %s1638_s25 = sadd.s32 4294967294, %s1090_s30  }
 0x18d   : > { %s752_s22 = sand.u32 1, %s1638_s25  }
 0x18e   : > { %s753_s12 = scalar_lea.sflag [#allocation5], %s752_s22 }
 0x18f   : > { %1073 = dma.done.wait (%p907_p10), %s753_s12, 256  }
 0x190   : > { %1075 = vsyncadd (%p907_p10), %s753_s12, 4294967040  ;;  %p22_p5 = scmp.ge.s32.totalorder %s1163_s11, 5   ;;  %s1639_s27 = smov %s1082_s28 }
 0x191   : > { %s1640_s28 = smov %s1086_s29  ;;  %s1641_s29 = smov %s1176_s14 }
 0x192   : > { %s1642_s30 = smov %s1163_s11  ;;  %24 = sbr.rel (!%p22_p5) target bundleno = 10 (0xa), region = 117 }
 0x197   :  { %769 = vsyncpa [#allocation3], 1 }
 0x198   :  { %771 = vsyncpa [#allocation3 + $0x1], 1 }
 0x199   :  { %772 = vsyncpa [#allocation5], 1 }
 0x19a   :  { %774 = vsyncpa [#allocation5 + $0x1], 1 }

</bundles_post_ra>
